<compile_context>
chip_gen: v7x
topology: tpu7x:2x2x1
jax: 0.10.0
libtpu: 0.0.40
codegen_flags: <defaults>
</compile_context>

<pallas_src>
import functools

import jax
import jax.numpy as jnp
from jax import lax
from jax.experimental import pallas as pl
from jax.experimental.pallas import tpu as pltpu


_TILE_MAX = 256                    # rows per grid step (amortises per-step overhead)
_WINDOW = 8                        # outstanding row DMAs on the HBM-gather path
_VMEM_TABLE_MAX_BYTES = 2 << 20    # resident-table fast-path gate (safe on v7x 64MiB VMEM)
_VMEM_ONEHOT_MAX_BYTES = 2 << 20   # cap on the (tile, n_embed) one-hot intermediate
_VMEM_LIMIT_BYTES = 32 << 20       # explicit scoped-VMEM limit (default on v6e/v7x)


def _vmem_table_kernel(idx_ref, table_ref, out_ref):
    """Fast path: table resident in VMEM; gather = one-hot @ table on the MXU.

    idx_ref:   (tile, 1)         int32  VMEM
    table_ref: (n_embed, z_dim)         VMEM  (grid-invariant block -> DMA'd once)
    out_ref:   (tile, z_dim)            VMEM  pipelined output block
    """
    tile = out_ref.shape[0]
    n_embed = table_ref.shape[0]
    ids = idx_ref[...]                                          # (tile, 1)
    cols = lax.broadcasted_iota(jnp.int32, (tile, n_embed), 1)  # (tile, n_embed)
    one_hot = (cols == ids).astype(table_ref.dtype)
    out_ref[...] = jnp.dot(
        one_hot, table_ref[...], preferred_element_type=jnp.float32
    ).astype(out_ref.dtype)


def _hbm_gather_kernel(idx_ref, table_hbm, out_ref, sem, *, n_valid):
    """Fallback: per-row HBM DMA gather straight into the output block.

    idx_ref:   (n_pad,)          int32  SMEM  (scalar-prefetched, pre-clamped)
    table_hbm: (n_embed, z_dim)         HBM   (memory_space=pl.ANY, no auto-DMA)
    out_ref:   (tile, z_dim)            VMEM  pipelined output block (DMA target)
    sem:       (_WINDOW,)               DMA semaphores (ring)
    """
    tile = out_ref.shape[0]
    base = pl.program_id(0) * tile

    def start_row(r):
        @pl.when(base + r < n_valid)           # skip padded rows entirely
        def _():
            row = idx_ref[base + r]            # SMEM scalar read
            pltpu.make_async_copy(
                table_hbm.at[pl.ds(row, 1), :],
                out_ref.at[pl.ds(r, 1), :],    # land directly in the output block
                sem.at[r & (_WINDOW - 1)],
            ).start()

    def wait_row(r):
        @pl.when(base + r < n_valid)
        def _():
            # .wait() only cares about the semaphore slot and the copy size, so use
            # a static descriptor: no SMEM index reads / address math on the wait path.
            pltpu.make_async_copy(
                table_hbm.at[pl.ds(0, 1), :],
                out_ref.at[pl.ds(0, 1), :],
                sem.at[r & (_WINDOW - 1)],
            ).wait()

    # Bounded-window ring: at most _WINDOW copies in flight; the wait issued at step
    # r retires exactly row r-_WINDOW (same slot), so credits always balance even
    # when padded rows are skipped (skips only ever form a suffix of the tile).
    for r in range(_WINDOW):                   # warm-up, statically unrolled
        start_row(r)

    if tile > _WINDOW:
        def steady(r, carry):
            wait_row(r - _WINDOW)
            start_row(r)
            return carry
        lax.fori_loop(_WINDOW, tile, steady, None, unroll=8)

    for r in range(tile - _WINDOW, tile):      # drain, statically unrolled
        wait_row(r)


def _round_up(x, m):
    return (x + m - 1) // m * m


@functools.partial(jax.jit, static_argnames=("force_hbm_gather",))
def index_embed(indices, table, *, force_hbm_gather=False):
    """Pallas equivalent of Embed.forward: nn.Embedding(n_embed, z_dim)(indices)."""
    idx_shape = indices.shape
    n_embed, z_dim = table.shape
    itemsize = table.dtype.itemsize

    flat = indices.reshape(-1).astype(jnp.int32)
    # nn.Embedding raises on out-of-range indices; an unchecked gather would read
    # garbage / fault, so clamp (this also keeps the zero padding rows valid).
    flat = jnp.clip(flat, 0, n_embed - 1)
    n = flat.shape[0]

    table_bytes = n_embed * z_dim * itemsize
    use_vmem_table = (
        (not force_hbm_gather)
        and table_bytes <= _VMEM_TABLE_MAX_BYTES
        and n_embed <= 4096
    )

    # Tile choice: large enough to amortise per-step overhead, small enough that the
    # grid has >=2 steps so both v7x TensorCores get work ("parallel" semantics).
    tile = min(_TILE_MAX, max(8, _round_up((n + 1) // 2, 8)))
    if use_vmem_table:
        # Keep the (tile, n_embed) one-hot intermediate bounded in VMEM/vregs.
        tile = min(tile, max(8, (_VMEM_ONEHOT_MAX_BYTES // (4 * n_embed)) // 8 * 8))
    n_pad = _round_up(n, tile)
    flat = jnp.pad(flat, (0, n_pad - n))
    grid = (n_pad // tile,)

    compiler_params = pltpu.CompilerParams(
        dimension_semantics=("parallel",),
        vmem_limit_bytes=_VMEM_LIMIT_BYTES,
    )

    if use_vmem_table:
        # Fast path: one bulk table DMA (grid-invariant block -> fetched once, kept
        # resident), fully vectorised in-VMEM gather, zero per-row DMA descriptors.
        out = pl.pallas_call(
            _vmem_table_kernel,
            out_shape=jax.ShapeDtypeStruct((n_pad, z_dim), table.dtype),
            grid=grid,
            in_specs=[
                pl.BlockSpec((tile, 1), lambda i: (i, 0)),
                pl.BlockSpec((n_embed, z_dim), lambda i: (0, 0)),
            ],
            out_specs=pl.BlockSpec((tile, z_dim), lambda i: (i, 0)),
            compiler_params=compiler_params,
            cost_estimate=pl.CostEstimate(
                flops=2 * n_pad * n_embed * z_dim,
                transcendentals=0,
                bytes_accessed=table_bytes + n_pad * (4 + z_dim * itemsize),
            ),
        )(flat.reshape(n_pad, 1), table)
    else:
        # Fallback: table stays in HBM, only the hit rows move.
        # TODO(synk): for very large index counts (N >> 100k), switch indices from
        # whole-array scalar prefetch (SMEM pads to next_pow2(4N)) to per-tile SMEM
        # input blocks.
        out = pl.pallas_call(
            functools.partial(_hbm_gather_kernel, n_valid=n),
            out_shape=jax.ShapeDtypeStruct((n_pad, z_dim), table.dtype),
            grid_spec=pltpu.PrefetchScalarGridSpec(
                num_scalar_prefetch=1,                       # indices -> SMEM
                grid=grid,
                in_specs=[pl.BlockSpec(memory_space=pl.ANY)],  # table stays in HBM
                out_specs=pl.BlockSpec((tile, z_dim), lambda i, idx: (i, 0)),
                scratch_shapes=[pltpu.SemaphoreType.DMA((_WINDOW,))],
            ),
            compiler_params=compiler_params,
            cost_estimate=pl.CostEstimate(
                flops=0,
                transcendentals=0,
                bytes_accessed=2 * n_pad * z_dim * itemsize + n_pad * 4,
            ),
        )(flat, table)

    return out[:n].reshape(idx_shape + (z_dim,))


if __name__ == "__main__":
    key = jax.random.PRNGKey(0)
    k_idx, k_tab, k_idx2 = jax.random.split(key, 3)

    n_embed, z_dim = 32, 128          # nn.Embedding(n_embed, z_dim)
    batch, seq = 2, 8                 # forward input: integer indices (2, 8)

    # Module-faithful weights: Embed.init_embed_weight() sets every entry to 0.5.
    table = jnp.full((n_embed, z_dim), 0.5, dtype=jnp.float32)
    idx = jax.random.randint(k_idx, (batch, seq), 0, n_embed, dtype=jnp.int32)

    # 1) Module-faithful forward (small vocab -> VMEM-resident fast path).
    out = jax.block_until_ready(index_embed(idx, table))
    assert out.shape == (batch, seq, z_dim)
    assert jnp.array_equal(out, table[idx])

    # 2) Random table so the gather itself is really checked (fast path, MXU one-hot;
    #    tolerance only covers matmul rounding — a wrong-row gather would be O(1) off).
    rnd = jax.random.normal(k_tab, (n_embed, z_dim), dtype=jnp.float32)
    out2 = jax.block_until_ready(index_embed(idx, rnd))
    assert jnp.allclose(out2, rnd[idx], atol=1e-2, rtol=0.0)

    # 3) Large-vocab fallback (per-row HBM DMA gather) forced on the same inputs —
    #    pure data movement, so bit-exact.
    out3 = jax.block_until_ready(index_embed(idx, rnd, force_hbm_gather=True))
    assert jnp.array_equal(out3, rnd[idx])

    # 4) Ragged index count so the padded-row pl.when guard is exercised.
    idx_ragged = jax.random.randint(k_idx2, (3, 5), 0, n_embed, dtype=jnp.int32)
    out4 = jax.block_until_ready(index_embed(idx_ragged, rnd, force_hbm_gather=True))
    assert jnp.array_equal(out4, rnd[idx_ragged])

    print("KERNEL_OK")
</pallas_src>

<mosaic_0001>
module attributes {stable_mosaic.version = 11 : i64} {
  func.func @_vmem_table_kernel(%arg0: i32, %arg1: memref<8x1xi32, #tpu.memory_space<vmem>>, %arg2: memref<32x128xf32, #tpu.memory_space<vmem>>, %arg3: memref<8x128xf32, #tpu.memory_space<vmem>>) attributes {dimension_semantics = [#tpu.dimension_semantics<parallel>], iteration_bounds = array<i64: 2>, scalar_prefetch = 0 : i64, scratch_operands = 0 : i64, tpu.core_type = #tpu.core_type<tc>, window_params = [{transform_indices = @transform_0, window_bounds = array<i64: 8, 1>}, {pipeline_mode = #tpu.pipeline_mode<synchronous>, transform_indices = @transform_1, window_bounds = array<i64: 32, 128>}, {transform_indices = @transform_2, window_bounds = array<i64: 8, 128>}]} {
    %c0 = arith.constant 0 : index
    %c0_0 = arith.constant 0 : index
    %0 = vector.load %arg1[%c0, %c0_0] : memref<8x1xi32, #tpu.memory_space<vmem>>, vector<8x1xi32>
    %1 = tpu.iota {dimensions = array<i32: 1>} : vector<8x32xi32>
    %2 = vector.broadcast %0 : vector<8x1xi32> to vector<8x32xi32>
    %3 = arith.cmpi eq, %1, %2 : vector<8x32xi32>
    %4 = arith.extui %3 : vector<8x32xi1> to vector<8x32xi32>
    %5 = arith.sitofp %4 : vector<8x32xi32> to vector<8x32xf32>
    %c0_1 = arith.constant 0 : index
    %c0_2 = arith.constant 0 : index
    %6 = vector.load %arg2[%c0_1, %c0_2] : memref<32x128xf32, #tpu.memory_space<vmem>>, vector<32x128xf32>
    %cst = arith.constant dense<0.000000e+00> : vector<8x128xf32>
    %7 = tpu.matmul %5, %6, %cst {dimension_numbers = #tpu.dot_dimension_numbers<[1], [0], [0], [1], [0, 0, 1, 1], [], []>} : vector<8x32xf32>, vector<32x128xf32>, vector<8x128xf32> -> vector<8x128xf32>
    %c0_3 = arith.constant 0 : index
    %c0_4 = arith.constant 0 : index
    %8 = vector.load %arg3[%c0_3, %c0_4] : memref<8x128xf32, #tpu.memory_space<vmem>>, vector<8x128xf32>
    tpu.vector_store %arg3[%c0_3, %c0_4], %7 {strides = array<i32>} : memref<8x128xf32, #tpu.memory_space<vmem>>, vector<8x128xf32>,
    return
  }
  func.func @transform_0(%arg0: i32) -> (i32, i32) {
    %c0_i32 = arith.constant 0 : i32
    %c0_i32_0 = arith.constant 0 : i32
    return %arg0, %c0_i32 : i32, i32
  }
  func.func @transform_1(%arg0: i32) -> (i32, i32) {
    %c0_i32 = arith.constant 0 : i32
    %c0_i32_0 = arith.constant 0 : i32
    %c0_i32_1 = arith.constant 0 : i32
    return %c0_i32, %c0_i32_0 : i32, i32
  }
  func.func @transform_2(%arg0: i32) -> (i32, i32) {
    %c0_i32 = arith.constant 0 : i32
    %c0_i32_0 = arith.constant 0 : i32
    return %arg0, %c0_i32 : i32, i32
  }
}

</mosaic_0001>

<bundles_post_ra>
// kernel: index_embed.1
= control target key start
LH: loop header
LB: loop body
LE: loop exit
PB: predicated region body
PF: predicated region fallthrough
CT: control target
= control target key end

     0   :  { %7 = vsyncpa [#allocation3], 0  ;;  %s674_s0 = inlined_call_operand.vmem [shape: s32[16,1], index: 0, kind: input, shape index: {}]   ;;  %s675_s1 = inlined_call_operand.hbm [shape: f32[32,128], index: 1, kind: input, shape index: {}]   ;;  %s676_s2 = inlined_call_operand.hbm [shape: f32[16,128], index: 2, kind: output, shape index: {}]  }
   0x1   :  { %8 = vsyncpa [#allocation4], 0 }
   0x2   :  { %10 = vsyncpa [#allocation4 + $0x1], 0  ;;  %s539_s9 = smov 0   ;;  %s541_s10 = smov 0  }
   0x3   :  { %s543_s11 = smov 0   ;;  %s545_s12 = smov 0  }
   0x4 LB: > { %s560_s13 = sadd.s32 4294967295, %s514_s12   ;;  %s327_s14 = sadd.s32 4294967294, %s514_s12   ;;  %s514_s12 = sphi %s545_s12, %s692_s12   ;;  %s510_s11 = sphi %s543_s11, %s691_s11   ;;  %s506_s10 = sphi %s541_s10, %s690_s10   ;;  %s502_s9 = sphi %s539_s9, %s689_s9  }
   0x5   : > { %s564_s15 = sadd.s32 1, %s514_s12   ;;  %s70_s16 = sadd.s32 1, %s510_s11 }
   0x6   : > { %s67_s17 = ssub.s32 %s514_s12, %s564_s15  ;;  %p80_p0 = scmp.ne.s32.totalorder %s510_s11, %s506_s10 }
   0x7   : > { %p68_p1 = scmp.eq.s32.totalorder %s67_s17, 0  ;;  %p81_p2 = scmp.eq.s32.totalorder %s560_s13, 1 }
   0x8   : > { %p86_p3 = scmp.ne.s32.totalorder %s506_s10, %s502_s9  ;;  %p87_p4 = scmp.eq.s32.totalorder %s327_s14, 1 }
   0x9   : > { %s575_s18 = scalar_select %p68_p1, %s510_s11, %s70_s16  }
   0xa   : > { %p577_p5 = por %p81_p2, %p80_p0  ;;  %p581_p6 = por %p87_p4, %p86_p3 }
   0xb   : > { %p328_p7 = scmp.ge.s32.totalorder %s514_s12, 1  ;;  %p94_p8 = scmp.lt.s32.totalorder %s514_s12, 3 }
   0xc   : > { %s680_s19 = scalar_select %p577_p5, 1, 0 }
   0xd   : > { %s681_s20 = scalar_select %p581_p6, 1, 0 }
   0xe   : > { %p677_p9 = scmp.eq.s32.totalorder %s560_s13, 0  ;;  %p588_p10 = pnand %p328_p7, %p94_p8 }
   0xf   : > { %s516_s22 = smov [#allocation2]   ;;  %s420_s27 = scalar_lea.hbm %s675_s1, 512 }
  0x10   : > { %s682_s21 = scalar_select %p588_p10, 1, 0 }
  0x11   : > { %s106_s23 = sshll.u32 %s516_s22, 4  ;;  %p369_p11 = pneg %p588_p10  ;;  %s107_s23 = int_to_ptr.vmem [resolvable:$true] %s106_s23 }
  0x12   : > { %p421_p13 = scmp.ne.s32.totalorder %s675_s1, %s420_s27  ;;  %p427_p3 = scmp.lt.u32.totalorder %s420_s27, %s675_s1 }
  0x13   : > { %p596_p12 = pnand %p677_p9, %p369_p11 }
  0x15   : > { %p422_p0 = pneg %p596_p12 }
  0x17   : > { %p423_p1 = pnand %p422_p0, %p421_p13 }
  0x19   : > { %p424_p2 = pneg %p423_p1 }
  0x1b   : > { %p429_p4 = pnand %p427_p3, %p424_p2 }
  0x1d   : > { %432 = shalt.err (!%p429_p4)
}
  0x1e   : > { %s433_s4 = scalar_lea.vmem %s107_s23, 512  ;;  %p441_p9 = scmp.lt.s32.totalorder %s107_s23, %s107_s23 }
  0x1f   : > { %p434_p7 = scmp.ne.s32.totalorder %s107_s23, %s433_s4  ;;  %p442_p6 = scmp.lt.s32.totalorder %s433_s4, %s433_s4 }
  0x21   : > { %p436_p8 = pnand %p434_p7, %p422_p0  ;;  %p443_p5 = por %p442_p6, %p441_p9 }
  0x23   : > { %p437_p11 = pneg %p436_p8 }
  0x25   : > { %p444_p10 = pnand %p443_p5, %p437_p11 }
  0x27   : > { %447 = shalt.err (!%p444_p10)
}
  0x28   : > { %s517_s5 = smov 128   ;;  %s518_s6 = smov 8  }
  0x29   : > { %372 = dma.hbm_to_vmem [thread:$0]  (!%p596_p12), %s675_s1, 512, %s107_s23, [#allocation3], %s517_s5, %s517_s5, %s518_s6  }
  0x2a   : > { %p684_p13 = scmp.ne.s32.totalorder %s682_s21, 0 }
  0x2b   : > { %p685_p1 = scmp.eq.s32.totalorder (!%p684_p13), %s560_s13, 0 }
  0x2c   : > { %129 = sbr.rel (%p684_p13) target bundleno = 415 (0x19f), region = 28 }
  0x33   : > { %493 = dma.done.wait (%p685_p1), [#allocation3], 512   ;;  %p686_p0 = pmov %p685_p1 }
  0x34   : > { %p150_p5 = scmp.lt.s32.totalorder %s560_s13, 1  ;;  %v519_v0 = vmov 0   ;;  %v520_v1 = vmov 0.0|0.0   ;;  %v163_v3 = vld [vmem:[#allocation2] sm:$0xff]  ;;  %v164_v4 = vld [vmem:[#allocation2 + $0x8] sm:$0xff]  ;;  %v165_v6 = vld [vmem:[#allocation2 + $0x10] sm:$0xff]  ;;  %v155_v10 = vlaneseq }
  0x35   : > { %495 = vsyncadd (%p686_p0), [#allocation3], 4294966784  ;;  %419 = vset.pattern.permute.xlu0 %v519_v0  ;;  %357 = vmatprep.subr.bf16.mxu0 %v520_v1  ;;  %v358_v5 = vpack.c.bf16 %v164_v4, %v163_v3  ;;  %v166_v7 = vld [vmem:[#allocation2 + $0x18] sm:$0xff]  ;;  %vm521_vm0 = vmmov 0   ;;  %v522_v8 = vmov 0.0   ;;  %vm167_vm1 = vcmask 261120  }
  0x36   : > { %s151_s14 = scalar_select %p150_p5, %s560_s13, 1  ;;  %354 = vmatprep.mubr.msk.f32.mxu0 %vm521_vm0, %v522_v8  ;;  %v361_v9 = vpack.c.bf16 %v166_v7, %v165_v6  ;;  %v156_v11 = vand.u32 127, %v155_v10 }
  0x37   : > { %359 = vmatpush3.bf16.msra.mxu0 %v358_v5  ;;  %s147_s23 = sand.u32 1, %s506_s10   ;;  %s338_s27 = sshll.u32 %s560_s13, 7 }
  0x38   : > { %s334_s16 = sshll.u32 %s151_s14, 3  ;;  %360 = vmatprep.subr.bf16.mxu0 %v520_v1  ;;  %s333_s24 = sshll.u32 %s147_s23, 3 }
  0x39   : > { %s153_s21 = scalar_lea.vmem %s674_s0, %s334_s16  ;;  %s149_s25 = scalar_lea.vmem [#allocation5], %s333_s24 }
  0x3a   : > { %v154_v2 = vld [vmem:[%s153_s21] sm:$0xff]  ;;  %s256_s26 = sshll.u32 %s149_s25, 4  ;;  %s634_s30 = scalar_lea.hbm %s676_s2, %s338_s27  ;;  %s629_s26 = int_to_ptr.vmem [resolvable:$true] %s256_s26 }
  0x3b   : > { %158 = vperm.xlu0 %419, %v154_v2   ;;  %362 = vmatpush3.bf16.msra.mxu0 %v361_v9  ;;  %s243_s3 = scalar_lea.sflag [#allocation4], %s147_s23  ;;  %s448_s4 = scalar_lea.vmem %s629_s26, 128 }
  0x3c   : > { %p449_p6 = scmp.ne.s32.totalorder %s629_s26, %s448_s4  ;;  %p687_p9 = scmp.ne.s32.totalorder %s680_s19, 0 }
  0x3d   : > { %s523_s13 = smov [#allocation5]  }
  0x3e   : > { %p450_p10 = pnand %p449_p6, %p687_p9  ;;  %s452_s5 = sshll.u32 %s523_s13, 4  ;;  %s453_s5 = int_to_ptr.vmem [resolvable:$false] %s452_s5 }
  0x3f   : > { %s454_s6 = scalar_lea.vmem %s453_s5, 256  ;;  %p455_p2 = scmp.lt.s32.totalorder %s629_s26, %s453_s5 }
  0x40   : > { %p451_p12 = pneg %p450_p10  ;;  %p456_p3 = scmp.lt.s32.totalorder %s454_s6, %s448_s4 }
  0x42   : > { %p457_p4 = por %p456_p3, %p455_p2 }
  0x44   : > { %p458_p7 = pnand %p457_p4, %p451_p12 }
  0xba   : > { %v159_v12 = vpop.permute.xlu0 %158 }
  0xbb   : > { %vm160_vm2 = vcmp.eq.s32.totalorder %v156_v11, %v159_v12 }
  0xbc   : > { %v335_v13 = vsel %vm160_vm2, 1.0, %v522_v8 }
  0xbd   : > { %355 = vmatmul.mubr.msk.f32.vlgmr.msra.gmra.mrb[0].mxu0 %vm167_vm1, %v335_v13 }
 0x190   : > { %v237_v14 = vpop.f32.mrb[0].mxu0 }
 0x191   : > { %241 = vst [vmem:[%s149_s25] sm:$0xff] %v237_v14  ;;  %v356_v15 = vpop.f32.mrb[1].mxu0 }
 0x192   : > { %461 = shalt.err (!%p458_p7)
}
 0x193   : > { %s462_s7 = scalar_lea.hbm %s634_s30, 128  ;;  %s466_s16 = scalar_lea.hbm %s676_s2, 256 }
 0x194   : > { %p463_p8 = scmp.ne.s32.totalorder %s634_s30, %s462_s7  ;;  %p467_p1 = scmp.lt.u32.totalorder %s634_s30, %s676_s2 }
 0x195   : > { %p468_p0 = scmp.lt.u32.totalorder %s466_s16, %s462_s7  ;;  %p470_p6 = scmp.lt.u32.totalorder %s462_s7, %s634_s30 }
 0x196   : > { %p464_p11 = pnand %p463_p8, %p687_p9 }
 0x197   : > { %p469_p5 = por %p468_p0, %p467_p1 }
 0x198   : > { %p465_p13 = pneg %p464_p11 }
 0x199   : > { %p471_p10 = por %p470_p6, %p469_p5 }
 0x19b   : > { %p472_p12 = pnand %p471_p10, %p465_p13 }
 0x19d   : > { %475 = shalt.err (!%p472_p12)
}
 0x19e   : > { %367 = dma.vmem_to_hbm [thread:$0]  (%p687_p9), %s629_s26, 128, %s634_s30, %s243_s3  }
 0x19f PF: > { %p379_p2 = scmp.ge.s32.totalorder %s514_s12, 2  ;;  %s268_s21 = sand.u32 1, %s502_s9  }
 0x1a0   : > { %p688_p3 = scmp.ne.s32.totalorder %s681_s20, 0  ;;  %s269_s23 = scalar_lea.sflag [#allocation4], %s268_s21 }
 0x1a2   : > { %p374_p4 = pnand %p379_p2, %p688_p3 }
 0x1a4   : > { %497 = dma.done.wait (!%p374_p4), %s269_s23, 128  }
 0x1a5   : > { %499 = vsyncadd (!%p374_p4), %s269_s23, 4294967168  ;;  %p13_p7 = scmp.ge.s32.totalorder %s564_s15, 4   ;;  %s689_s9 = smov %s506_s10 }
 0x1a6   : > { %s690_s10 = smov %s510_s11  ;;  %s691_s11 = smov %s575_s18 }
 0x1a7   : > { %s692_s12 = smov %s564_s15  ;;  %15 = sbr.rel (!%p13_p7) target bundleno = 4 (0x4), region = 68 }
 0x1ae   :  { %274 = vsyncpa [#allocation3], 1 }
 0x1af   :  { %276 = vsyncpa [#allocation3 + $0x1], 1 }
 0x1b0   :  { %277 = vsyncpa [#allocation4], 1 }
 0x1b1   :  { %279 = vsyncpa [#allocation4 + $0x1], 1 }

</bundles_post_ra>
